<compile_context>
chip_gen: v7x
topology: tpu7x:2x2x1
jax: 0.10.0
libtpu: 0.0.40
codegen_flags: <defaults>
</compile_context>

<pallas_src>
import jax
import jax.numpy as jnp
from jax.experimental import pallas as pl
from jax.experimental.pallas import tpu as pltpu


def _router_kernel(x_ref, w_ref, o_ref):
    # x_ref: (TN, D) stream_dtype, w_ref: (D, C) stream_dtype, o_ref: (TN, C).
    # Plain (M,K)x(K,N) on the MXU with f32 accumulation; cast on store.
    o_ref[...] = jnp.dot(
        x_ref[...], w_ref[...], preferred_element_type=jnp.float32
    ).astype(o_ref.dtype)


def _choose_tile_n(n, per_row_bytes, budget_bytes):
    """Largest row tile whose double-buffered x/out fit the VMEM budget."""
    max_rows = max(int(budget_bytes // max(per_row_bytes, 1)), 16)
    if n <= max_rows and n <= 2048:
        return n                          # one block; block dim == full array dim
    tile = min(max_rows, 1024, n)
    if tile >= 256:
        tile = (tile // 256) * 256        # MXU / sublane friendly
    else:
        tile = max((tile // 16) * 16, 16)  # bf16 sublane packing (16, 128)
    return tile


def prepare_router_weights(w_out, stream_dtype=jnp.bfloat16):
    """One-time (C, D) -> (D, C) transpose + cast.  Cache the result."""
    return jnp.asarray(w_out, dtype=stream_dtype).T


def router_matmul(x, w_t, *, tile_n=None, stream_dtype=jnp.bfloat16,
                  vmem_budget_bytes=40 << 20):
    """out[n, c] = sum_d x[n, d] * w_t[d, c]   (w_t is pre-transposed (D, C))."""
    N, D = x.shape
    D2, C = w_t.shape
    assert D == D2, "embedding dims must match"

    out_dtype = x.dtype
    x_s = x if x.dtype == stream_dtype else x.astype(stream_dtype)
    w_s = w_t if w_t.dtype == stream_dtype else w_t.astype(stream_dtype)
    x_isz = jnp.dtype(stream_dtype).itemsize
    o_isz = jnp.dtype(out_dtype).itemsize

    # Row-tile selection: double-buffered x tile + double-buffered out tile
    # per row; W (tiny: D x C) reserved off the top of the budget.
    w_bytes = 2 * D * C * x_isz
    per_row = 2 * D * x_isz + 2 * C * o_isz
    budget = max(vmem_budget_bytes - w_bytes, 1 << 20)
    if tile_n is None:
        tile_n = _choose_tile_n(N, per_row, budget)
    tile_n = max(int(tile_n), 1)
    if tile_n >= N:
        tile_n = N                               # block dim == full array dim
    else:
        tile_n = min(max((tile_n // 16) * 16, 16), N)

    grid = (pl.cdiv(N, tile_n),)                 # ragged edge handled by Pallas

    # Exact VMEM accounting (+ headroom), instead of a 2x heuristic / 32 MiB cap.
    buf_bytes = 2 * tile_n * D * x_isz + w_bytes + 2 * tile_n * C * o_isz
    vmem_limit = int(min(max(buf_bytes + (4 << 20), 16 << 20), 96 << 20))

    cost = pl.CostEstimate(
        flops=2 * N * D * C,
        transcendentals=0,
        bytes_accessed=N * D * x_isz + D * C * x_isz + N * C * o_isz,
    )

    return pl.pallas_call(
        _router_kernel,
        out_shape=jax.ShapeDtypeStruct((N, C), out_dtype),
        grid_spec=pltpu.PrefetchScalarGridSpec(
            num_scalar_prefetch=0,
            grid=grid,
            in_specs=[
                # Streamed x tile (TN, D); D is the full array dim.
                pl.BlockSpec((tile_n, D), lambda i: (i, 0)),
                # Resident W (D, C): constant block index -> fetched once.
                pl.BlockSpec((D, C), lambda i: (0, 0)),
            ],
            # Output block spans the full class dim -> contiguous HBM writeback.
            out_specs=pl.BlockSpec((tile_n, C), lambda i: (i, 0)),
        ),
        compiler_params=pltpu.CompilerParams(
            dimension_semantics=("parallel",),   # shards N tiles across TCs on v7x
            vmem_limit_bytes=vmem_limit,
        ),
        cost_estimate=cost,
    )(x_s, w_s)
    # TODO(synk): if D grows too large to keep a (tile_n, D) slab in VMEM, add a
    # K grid axis with a VMEM f32 accumulator (pl.when init/finalize).
    # TODO(synk): on v7x, if a profile shows exposed DMA on the x stream, sweep
    # pipeline_mode=pl.Buffered(3) on the x BlockSpec.


def router_forward(x, w_out, *, tile_n=None, stream_dtype=jnp.bfloat16,
                   vmem_budget_bytes=40 << 20):
    """Functional form: einsum('od,nd->no', w_out, x) with w_out of shape (C, D)."""
    w_t = prepare_router_weights(w_out, stream_dtype)
    return router_matmul(x, w_t, tile_n=tile_n, stream_dtype=stream_dtype,
                         vmem_budget_bytes=vmem_budget_bytes)


class Router:
    """JAX/Pallas analogue of the PyTorch Router; weights cached pre-transposed."""

    def __init__(self, d_embedding, n_classes, scale=0.001, *, key,
                 stream_dtype=jnp.bfloat16):
        self.stream_dtype = stream_dtype
        self.W_out = jax.random.normal(
            key, (n_classes, d_embedding), jnp.float32) * scale
        # Transpose + cast once; reused across every forward call.
        self.w_t = prepare_router_weights(self.W_out, stream_dtype)

    def __call__(self, x, **kwargs):
        return router_matmul(x, self.w_t, stream_dtype=self.stream_dtype, **kwargs)


if __name__ == "__main__":
    key = jax.random.PRNGKey(0)
    SCALE = 0.001

    # Case 1: small shapes matching Router(d_embedding=32, n_classes=16);
    # exact f32 streaming path, single-block grid.
    N, D, C = 8, 32, 16
    kx, kw, k2 = jax.random.split(key, 3)
    x = jax.random.normal(kx, (N, D), dtype=jnp.float32)
    w_out = jax.random.normal(kw, (C, D), dtype=jnp.float32) * SCALE
    out = jax.block_until_ready(router_forward(x, w_out, stream_dtype=jnp.float32))
    ref = jnp.einsum("od,nd->no", w_out, x)
    assert out.shape == (N, C) and out.dtype == jnp.float32
    assert jnp.allclose(out, ref, atol=1e-5, rtol=1e-5)

    # Case 2: bf16-streamed, multi-tile pipelined path with a ragged last
    # block (N2=520 is not a multiple of the 256-row tile; no jnp.pad copy).
    N2, D2, C2 = 520, 256, 16
    kx2, kw2 = jax.random.split(k2)
    x2 = jax.random.normal(kx2, (N2, D2), dtype=jnp.float32)
    router = Router(D2, C2, scale=SCALE, key=kw2)
    out2 = jax.block_until_ready(router(x2, tile_n=256))
    assert out2.shape == (N2, C2)
    # Tight check against the bf16-quantised reference (isolates kernel math).
    ref2_q = jnp.einsum(
        "od,nd->no",
        router.W_out.astype(jnp.bfloat16).astype(jnp.float32),
        x2.astype(jnp.bfloat16).astype(jnp.float32))
    assert jnp.allclose(out2, ref2_q, atol=1e-5, rtol=1e-3)
    # Loose check against the full-precision reference (bf16 streaming error).
    ref2 = jnp.einsum("od,nd->no", router.W_out, x2)
    assert jnp.allclose(out2, ref2, atol=5e-4, rtol=5e-2)

    print("KERNEL_OK")
</pallas_src>

<mosaic_0001>
module attributes {stable_mosaic.version = 11 : i64} {
  func.func @_router_kernel(%arg0: i32, %arg1: memref<8x32xf32, #tpu.memory_space<vmem>>, %arg2: memref<32x16xf32, #tpu.memory_space<vmem>>, %arg3: memref<8x16xf32, #tpu.memory_space<vmem>>) attributes {dimension_semantics = [#tpu.dimension_semantics<parallel>], iteration_bounds = array<i64: 1>, scalar_prefetch = 0 : i64, scratch_operands = 0 : i64, tpu.core_type = #tpu.core_type<tc>, window_params = [{transform_indices = @transform_0, window_bounds = array<i64: 8, 32>}, {pipeline_mode = #tpu.pipeline_mode<synchronous>, transform_indices = @transform_1, window_bounds = array<i64: 32, 16>}, {transform_indices = @transform_2, window_bounds = array<i64: 8, 16>}]} {
    %c0 = arith.constant 0 : index
    %c0_0 = arith.constant 0 : index
    %0 = vector.load %arg1[%c0, %c0_0] : memref<8x32xf32, #tpu.memory_space<vmem>>, vector<8x32xf32>
    %c0_1 = arith.constant 0 : index
    %c0_2 = arith.constant 0 : index
    %1 = vector.load %arg2[%c0_1, %c0_2] : memref<32x16xf32, #tpu.memory_space<vmem>>, vector<32x16xf32>
    %cst = arith.constant dense<0.000000e+00> : vector<8x16xf32>
    %2 = tpu.matmul %0, %1, %cst {dimension_numbers = #tpu.dot_dimension_numbers<[1], [0], [0], [1], [0, 0, 1, 1], [], []>} : vector<8x32xf32>, vector<32x16xf32>, vector<8x16xf32> -> vector<8x16xf32>
    %c0_3 = arith.constant 0 : index
    %c0_4 = arith.constant 0 : index
    %3 = vector.load %arg3[%c0_3, %c0_4] : memref<8x16xf32, #tpu.memory_space<vmem>>, vector<8x16xf32>
    tpu.vector_store %arg3[%c0_3, %c0_4], %2 {strides = array<i32>} : memref<8x16xf32, #tpu.memory_space<vmem>>, vector<8x16xf32>,
    return
  }
  func.func @transform_0(%arg0: i32) -> (i32, i32) {
    %c0_i32 = arith.constant 0 : i32
    %c0_i32_0 = arith.constant 0 : i32
    return %arg0, %c0_i32 : i32, i32
  }
  func.func @transform_1(%arg0: i32) -> (i32, i32) {
    %c0_i32 = arith.constant 0 : i32
    %c0_i32_0 = arith.constant 0 : i32
    %c0_i32_1 = arith.constant 0 : i32
    return %c0_i32, %c0_i32_0 : i32, i32
  }
  func.func @transform_2(%arg0: i32) -> (i32, i32) {
    %c0_i32 = arith.constant 0 : i32
    %c0_i32_0 = arith.constant 0 : i32
    return %arg0, %c0_i32 : i32, i32
  }
}

</mosaic_0001>

<bundles_post_ra>
// kernel: tpu_custom_call.1
= control target key start
LH: loop header
LB: loop body
LE: loop exit
PB: predicated region body
PF: predicated region fallthrough
CT: control target
= control target key end

     0   :  { %v158_v3 = vmov 0.0|0.0   ;;  %vm159_vm0 = vmmov 0   ;;  %v160_v6 = vmov 0.0   ;;  %s204_s0 = inlined_call_operand.vmem [shape: f32[8,32], index: 0, kind: input, shape index: {}]   ;;  %s205_s1 = inlined_call_operand.vmem [shape: f32[32,16], index: 1, kind: input, shape index: {}]   ;;  %s206_s2 = inlined_call_operand.hbm [shape: f32[8,16], index: 2, kind: output, shape index: {}]  }
   0x1   :  { %v13_v0 = vld [vmem:[%s205_s1] sm:$0xff]  ;;  %v14_v1 = vld [vmem:[%s205_s1 + $0x8] sm:$0xff]  ;;  %v15_v2 = vld [vmem:[%s205_s1 + $0x10] sm:$0xff]  ;;  %124 = vmatprep.subr.bf16.mxu0 %v158_v3  ;;  %121 = vmatprep.mubr.msk.f32.mxu0 %vm159_vm0, %v160_v6 }
   0x2   :  { %v125_v4 = vpack.c.bf16 %v14_v1, %v13_v0  ;;  %v16_v5 = vld [vmem:[%s205_s1 + $0x18] sm:$0xff] }
   0x3   :  { %7 = vsyncpa [#allocation3], 0  ;;  %v128_v7 = vpack.c.bf16 %v16_v5, %v15_v2  ;;  %v12_v8 = vld [vmem:[%s204_s0] sm:$0xff]  ;;  %vm17_vm1 = vcmask 261120   ;;  %s161_s19 = smov [#allocation2]   ;;  %vm91_vm2 = vcmask 130048  }
   0x4   :  { %126 = vmatpush3.bf16.msra.mxu0 %v125_v4  ;;  %s99_s20 = sshll.u32 %s161_s19, 4  ;;  %s100_s20 = int_to_ptr.vmem [resolvable:$true] %s99_s20 }
   0x5   :  { %127 = vmatprep.subr.bf16.mxu0 %v158_v3  ;;  %s134_s1 = scalar_lea.vmem %s100_s20, 128  ;;  %p139_p1 = scmp.lt.s32.totalorder %s100_s20, %s100_s20 }
   0x6   :  { %p135_p0 = scmp.ne.s32.totalorder %s100_s20, %s134_s1  ;;  %p140_p2 = scmp.lt.s32.totalorder %s134_s1, %s134_s1 }
   0x8   :  { %129 = vmatpush3.bf16.msra.mxu0 %v128_v7  ;;  %p141_p3 = por %p140_p2, %p139_p1 }
   0xa   :  { %p142_p4 = pnand %p141_p3, %p135_p0 }
   0xb   :  { %122 = vmatmul.mubr.msk.f32.vlgmr.msra.gmra.mrb[0].mxu0 %vm17_vm1, %v12_v8 }
  0xde   :  { %v87_v9 = vpop.f32.mrb[0].mxu0 }
  0xdf   :  { %92 = vst.msk [vmem:[#allocation2] sm:$0xff] %vm91_vm2, %v87_v9  ;;  %v123_v10 = vpop.f32.mrb[1].mxu0 }
  0xe0   :  { %145 = shalt.err (!%p142_p4)
}
  0xe1   :  { %s146_s0 = scalar_lea.hbm %s206_s2, 128 }
  0xe2   :  { %p147_p5 = scmp.ne.s32.totalorder %s206_s2, %s146_s0  ;;  %p150_p6 = scmp.lt.u32.totalorder %s146_s0, %s206_s2 }
  0xe4   :  { %p152_p7 = pnand %p150_p6, %p147_p5 }
  0xe6   :  { %155 = shalt.err (!%p152_p7)
}
  0xe7   :  { %102 = dma.vmem_to_hbm [thread:$0]  %s100_s20, 128, %s206_s2, [#allocation3]  }
  0xe8   :  { %156 = dma.done.wait [#allocation3], 128  }
  0xe9   :  { %157 = vsyncadd [#allocation3], 4294967168 }
  0xea   :  { %106 = vsyncpa [#allocation3], 1 }

</bundles_post_ra>
